<compile_context>
chip_gen: v6e
topology: v6e:2x2x1
jax: 0.10.0
libtpu: 0.0.40
codegen_flags: <defaults>
</compile_context>

<pallas_src>
import jax
import jax.numpy as jnp
from jax import lax
from jax.experimental import pallas as pl
from jax.experimental.pallas import tpu as pltpu

# ---------------- model config (small, consistent with the module) ----------
BATCH = 2
NUM_TOKENS = 8
D_IN = 32
D_OUT = 32
NUM_HEADS = 4
HEAD_DIM = D_OUT // NUM_HEADS
CONTEXT_LENGTH = 16      # buffer size in the module; mask is sliced to T, so only T matters here
DROPOUT_P = 0.0          # TODO(synk): dropout is identity (eval mode / p=0); no RNG masking in-kernel.
D_OUT_PAD = 128          # lane-dense output width (multiple of 128 lanes)


def mha_kernel(x_ref, wqkv_ref, wo_ref, bo_ref, bias_ref, o_ref):
    # x_ref:    (T, d_in)          one batch's tokens
    # wqkv_ref: (d_in, 3*d_out)    fused [Wq/sqrt(hd) | Wk | Wv]
    # wo_ref:   (d_out, 128)       zero-padded output projection weight
    # bo_ref:   (1, 128)           zero-padded output bias
    # bias_ref: (H*T, H*T)         additive mask: 0 = keep, -inf = masked
    # o_ref:    (T, 128)           lane-dense output slab for this batch

    # Fused QKV projection: one MXU push, bf16 operands, f32 accumulation.
    qkv = jnp.dot(x_ref[...].astype(jnp.bfloat16),
                  wqkv_ref[...].astype(jnp.bfloat16),
                  preferred_element_type=jnp.float32)            # (T, 3*d_out) f32

    # Rearrange heads to sublanes: (T, H*hd) -> (H*T, hd). Aligned 8-lane slices
    # + one sublane concat each; this buys single large score/softmax/PV passes.
    def heads_to_rows(col0):
        return jnp.concatenate(
            [qkv[:, col0 + h * HEAD_DIM: col0 + (h + 1) * HEAD_DIM]
             for h in range(NUM_HEADS)],
            axis=0)                                              # (H*T, hd)

    q_r = heads_to_rows(0)           # 1/sqrt(head_dim) already folded into Wq
    k_r = heads_to_rows(D_OUT)
    v_r = heads_to_rows(2 * D_OUT)

    # One block-diagonal scores matmul for all heads of this batch (contraction
    # over head_dim; no explicit transpose).
    s = lax.dot_general(q_r.astype(jnp.bfloat16), k_r.astype(jnp.bfloat16),
                        (((1,), (1,)), ((), ())),
                        preferred_element_type=jnp.float32)      # (H*T, H*T) f32
    s = s + bias_ref[...]                                        # -inf off-block / future keys

    # One softmax pass over the 32-lane key axis (f32 math; EUP approx reciprocal).
    m = jnp.max(s, axis=-1, keepdims=True)
    p = jnp.exp(s - m)
    denom = jnp.sum(p, axis=-1, keepdims=True)
    attn = p * pl.reciprocal(denom, approx=True)

    # One PV matmul; masked (off-block) attention entries are exactly zero.
    ctx_r = jnp.dot(attn.astype(jnp.bfloat16), v_r.astype(jnp.bfloat16),
                    preferred_element_type=jnp.float32)          # (H*T, hd) f32

    # Output projection with the head dimension folded in: per-head (T,hd)@(hd,128)
    # accumulated into a lane-dense f32 slab. No concatenate relayouts.
    wo = wo_ref[...]
    acc = jnp.zeros((NUM_TOKENS, D_OUT_PAD), jnp.float32)
    for h in range(NUM_HEADS):
        ctx_h = ctx_r[h * NUM_TOKENS:(h + 1) * NUM_TOKENS, :]
        wo_h = wo[h * HEAD_DIM:(h + 1) * HEAD_DIM, :]
        acc = acc + jnp.dot(ctx_h.astype(jnp.bfloat16), wo_h.astype(jnp.bfloat16),
                            preferred_element_type=jnp.float32)

    o_ref[...] = (acc + bo_ref[...]).astype(o_ref.dtype)         # unmasked 128-lane vst


def multi_head_attention(x, wq, wk, wv, wo, bo):
    """x: (B, T, d_in); wq/wk/wv: (d_in, d_out); wo: (d_out, d_out); bo: (1, d_out).

    Weights are the pre-transposed Linear weights (computes x @ W == x @ W_linear.weight.T).
    """
    B, T, d_in = x.shape
    d_out = wq.shape[1]
    pad = D_OUT_PAD - d_out
    ht = NUM_HEADS * T

    # Wrapper-side layout plumbing (cheap, outside the kernel).
    x_flat = x.reshape(B * T, d_in)
    scale = 1.0 / (HEAD_DIM ** 0.5)
    wqkv = jnp.concatenate([wq * scale, wk, wv], axis=1)   # (d_in, 3*d_out), scale folded into Wq
    wo_pad = jnp.pad(wo, ((0, 0), (0, pad)))               # (d_out, 128)
    bo_pad = jnp.pad(bo, ((0, 0), (0, pad)))               # (1, 128)

    # Precomputed additive mask for the head-stacked (H*T, H*T) score matrix:
    # keep iff same head block AND key token <= query token; else -inf.
    r = jnp.arange(ht)
    row_h, row_t = r // T, r % T
    keep = (row_h[:, None] == row_h[None, :]) & (row_t[None, :] <= row_t[:, None])
    mask_bias = jnp.where(keep, 0.0, -jnp.inf).astype(jnp.float32)   # (H*T, H*T)

    # Advisory cost estimate so XLA can overlap this tiny call with neighbors.
    flops = (2 * B * T * d_in * 3 * d_out        # fused QKV projection
             + 2 * B * ht * HEAD_DIM * ht        # block-diagonal scores
             + 2 * B * ht * ht * HEAD_DIM        # attn @ v
             + 2 * B * T * d_out * D_OUT_PAD)    # output projection (padded, head-folded)
    bytes_accessed = 4 * (B * T * d_in + d_in * 3 * d_out + d_out * D_OUT_PAD
                          + D_OUT_PAD + ht * ht + B * T * D_OUT_PAD)
    cost = pl.CostEstimate(flops=flops,
                           transcendentals=B * ht * ht,
                           bytes_accessed=bytes_accessed)

    out_pad = pl.pallas_call(
        mha_kernel,
        out_shape=jax.ShapeDtypeStruct((B * T, D_OUT_PAD), x.dtype),
        grid=(B,),  # one step per batch; both TCs on v7x, cheap serial steps on v5e/v6e
        in_specs=[
            pl.BlockSpec((T, d_in), lambda i: (i, 0)),
            pl.BlockSpec((d_in, 3 * d_out), lambda i: (0, 0)),
            pl.BlockSpec((d_out, D_OUT_PAD), lambda i: (0, 0)),
            pl.BlockSpec((1, D_OUT_PAD), lambda i: (0, 0)),
            pl.BlockSpec((ht, ht), lambda i: (0, 0)),
        ],
        out_specs=pl.BlockSpec((T, D_OUT_PAD), lambda i: (i, 0)),
        compiler_params=pltpu.CompilerParams(dimension_semantics=("parallel",)),
        cost_estimate=cost,
    )(x_flat, wqkv, wo_pad, bo_pad, mask_bias)

    return out_pad[:, :d_out].reshape(B, T, d_out)


def reference_mha(x, wq, wk, wv, wo, bo):
    """Pure-JAX f32 reference mirroring the PyTorch forward."""
    B, T, _ = x.shape
    q = x @ wq
    k = x @ wk
    v = x @ wv
    qh = q.reshape(B, T, NUM_HEADS, HEAD_DIM).transpose(0, 2, 1, 3)
    kh = k.reshape(B, T, NUM_HEADS, HEAD_DIM).transpose(0, 2, 1, 3)
    vh = v.reshape(B, T, NUM_HEADS, HEAD_DIM).transpose(0, 2, 1, 3)
    scores = qh @ kh.transpose(0, 1, 3, 2)
    mask = jnp.triu(jnp.ones((T, T), dtype=bool), k=1)
    scores = jnp.where(mask[None, None], -jnp.inf, scores)
    w = jax.nn.softmax(scores / (HEAD_DIM ** 0.5), axis=-1)
    ctx = (w @ vh).transpose(0, 2, 1, 3).reshape(B, T, D_OUT)
    return ctx @ wo + bo[0]


if __name__ == "__main__":
    key = jax.random.PRNGKey(0)
    kx, kq, kk, kv, ko, kb = jax.random.split(key, 6)

    x = jax.random.normal(kx, (BATCH, NUM_TOKENS, D_IN), dtype=jnp.float32)
    # Deterministic "Linear" parameters (already transposed for x @ W).
    wq = jax.random.normal(kq, (D_IN, D_OUT), dtype=jnp.float32) * 0.1
    wk = jax.random.normal(kk, (D_IN, D_OUT), dtype=jnp.float32) * 0.1
    wv = jax.random.normal(kv, (D_IN, D_OUT), dtype=jnp.float32) * 0.1
    wo = jax.random.normal(ko, (D_OUT, D_OUT), dtype=jnp.float32) * 0.1
    bo = jax.random.normal(kb, (1, D_OUT), dtype=jnp.float32) * 0.1

    out = multi_head_attention(x, wq, wk, wv, wo, bo)
    out = jax.block_until_ready(out)

    ref = reference_mha(x, wq, wk, wv, wo, bo)
    assert out.shape == (BATCH, NUM_TOKENS, D_OUT)
    # Tolerance covers bf16 MXU operands (f32 accumulation) + EUP approx reciprocal.
    assert jnp.allclose(out, ref, atol=2e-2, rtol=2e-2), "mismatch vs reference"

    print("KERNEL_OK")
</pallas_src>

<mosaic_0001>
module attributes {stable_mosaic.version = 11 : i64} {
  func.func @mha_kernel(%arg0: i32, %arg1: memref<8x32xf32, #tpu.memory_space<vmem>>, %arg2: memref<32x96xf32, #tpu.memory_space<vmem>>, %arg3: memref<32x128xf32, #tpu.memory_space<vmem>>, %arg4: memref<1x128xf32, #tpu.memory_space<vmem>>, %arg5: memref<32x32xf32, #tpu.memory_space<vmem>>, %arg6: memref<8x128xf32, #tpu.memory_space<vmem>>) attributes {dimension_semantics = [#tpu.dimension_semantics<parallel>], iteration_bounds = array<i64: 2>, scalar_prefetch = 0 : i64, scratch_operands = 0 : i64, tpu.core_type = #tpu.core_type<tc>, window_params = [{transform_indices = @transform_0, window_bounds = array<i64: 8, 32>}, {pipeline_mode = #tpu.pipeline_mode<synchronous>, transform_indices = @transform_1, window_bounds = array<i64: 32, 96>}, {pipeline_mode = #tpu.pipeline_mode<synchronous>, transform_indices = @transform_2, window_bounds = array<i64: 32, 128>}, {pipeline_mode = #tpu.pipeline_mode<synchronous>, transform_indices = @transform_3, window_bounds = array<i64: 1, 128>}, {pipeline_mode = #tpu.pipeline_mode<synchronous>, transform_indices = @transform_4, window_bounds = array<i64: 32, 32>}, {transform_indices = @transform_5, window_bounds = array<i64: 8, 128>}]} {
    %c0 = arith.constant 0 : index
    %c0_0 = arith.constant 0 : index
    %0 = vector.load %arg1[%c0, %c0_0] : memref<8x32xf32, #tpu.memory_space<vmem>>, vector<8x32xf32>
    %1 = arith.truncf %0 : vector<8x32xf32> to vector<8x32xbf16>
    %c0_1 = arith.constant 0 : index
    %c0_2 = arith.constant 0 : index
    %2 = vector.load %arg2[%c0_1, %c0_2] : memref<32x96xf32, #tpu.memory_space<vmem>>, vector<32x96xf32>
    %3 = arith.truncf %2 : vector<32x96xf32> to vector<32x96xbf16>
    %cst = arith.constant dense<0.000000e+00> : vector<8x96xf32>
    %4 = tpu.matmul %1, %3, %cst {dimension_numbers = #tpu.dot_dimension_numbers<[1], [0], [0], [1], [0, 0, 1, 1], [], []>} : vector<8x32xbf16>, vector<32x96xbf16>, vector<8x96xf32> -> vector<8x96xf32>
    %5 = vector.extract_strided_slice %4 {offsets = [0, 0], sizes = [8, 8], strides = [1, 1]} : vector<8x96xf32> to vector<8x8xf32>
    %6 = vector.extract_strided_slice %4 {offsets = [0, 8], sizes = [8, 8], strides = [1, 1]} : vector<8x96xf32> to vector<8x8xf32>
    %7 = vector.extract_strided_slice %4 {offsets = [0, 16], sizes = [8, 8], strides = [1, 1]} : vector<8x96xf32> to vector<8x8xf32>
    %8 = vector.extract_strided_slice %4 {offsets = [0, 24], sizes = [8, 8], strides = [1, 1]} : vector<8x96xf32> to vector<8x8xf32>
    %9 = tpu.concatenate %5, %6, %7, %8 in 0 : vector<8x8xf32>, vector<8x8xf32>, vector<8x8xf32>, vector<8x8xf32> -> vector<32x8xf32>
    %10 = vector.extract_strided_slice %4 {offsets = [0, 32], sizes = [8, 8], strides = [1, 1]} : vector<8x96xf32> to vector<8x8xf32>
    %11 = vector.extract_strided_slice %4 {offsets = [0, 40], sizes = [8, 8], strides = [1, 1]} : vector<8x96xf32> to vector<8x8xf32>
    %12 = vector.extract_strided_slice %4 {offsets = [0, 48], sizes = [8, 8], strides = [1, 1]} : vector<8x96xf32> to vector<8x8xf32>
    %13 = vector.extract_strided_slice %4 {offsets = [0, 56], sizes = [8, 8], strides = [1, 1]} : vector<8x96xf32> to vector<8x8xf32>
    %14 = tpu.concatenate %10, %11, %12, %13 in 0 : vector<8x8xf32>, vector<8x8xf32>, vector<8x8xf32>, vector<8x8xf32> -> vector<32x8xf32>
    %15 = vector.extract_strided_slice %4 {offsets = [0, 64], sizes = [8, 8], strides = [1, 1]} : vector<8x96xf32> to vector<8x8xf32>
    %16 = vector.extract_strided_slice %4 {offsets = [0, 72], sizes = [8, 8], strides = [1, 1]} : vector<8x96xf32> to vector<8x8xf32>
    %17 = vector.extract_strided_slice %4 {offsets = [0, 80], sizes = [8, 8], strides = [1, 1]} : vector<8x96xf32> to vector<8x8xf32>
    %18 = vector.extract_strided_slice %4 {offsets = [0, 88], sizes = [8, 8], strides = [1, 1]} : vector<8x96xf32> to vector<8x8xf32>
    %19 = tpu.concatenate %15, %16, %17, %18 in 0 : vector<8x8xf32>, vector<8x8xf32>, vector<8x8xf32>, vector<8x8xf32> -> vector<32x8xf32>
    %20 = arith.truncf %9 : vector<32x8xf32> to vector<32x8xbf16>
    %21 = arith.truncf %14 : vector<32x8xf32> to vector<32x8xbf16>
    %cst_3 = arith.constant dense<0.000000e+00> : vector<32x32xf32>
    %22 = tpu.matmul %20, %21, %cst_3 {dimension_numbers = #tpu.dot_dimension_numbers<[1], [1], [0], [0], [0, 0, 1, 0], [], []>} : vector<32x8xbf16>, vector<32x8xbf16>, vector<32x32xf32> -> vector<32x32xf32>
    %c0_4 = arith.constant 0 : index
    %c0_5 = arith.constant 0 : index
    %23 = vector.load %arg5[%c0_4, %c0_5] : memref<32x32xf32, #tpu.memory_space<vmem>>, vector<32x32xf32>
    %24 = arith.addf %22, %23 : vector<32x32xf32>
    %cst_6 = arith.constant dense<0xFF800000> : vector<32xf32>
    %25 = vector.multi_reduction <maximumf>, %24, %cst_6 [1] : vector<32x32xf32> to vector<32xf32>
    %26 = vector.shape_cast %25 : vector<32xf32> to vector<32x1xf32>
    %27 = vector.broadcast %26 : vector<32x1xf32> to vector<32x32xf32>
    %28 = arith.subf %24, %27 : vector<32x32xf32>
    %29 = math.exp %28 : vector<32x32xf32>
    %cst_7 = arith.constant dense<0.000000e+00> : vector<32xf32>
    %30 = vector.multi_reduction <add>, %29, %cst_7 [1] : vector<32x32xf32> to vector<32xf32>
    %31 = vector.shape_cast %30 : vector<32xf32> to vector<32x1xf32>
    %32 = tpu.reciprocal %31 {approx = true} : vector<32x1xf32> -> vector<32x1xf32>
    %33 = vector.broadcast %32 : vector<32x1xf32> to vector<32x32xf32>
    %34 = arith.mulf %29, %33 : vector<32x32xf32>
    %35 = arith.truncf %34 : vector<32x32xf32> to vector<32x32xbf16>
    %36 = arith.truncf %19 : vector<32x8xf32> to vector<32x8xbf16>
    %cst_8 = arith.constant dense<0.000000e+00> : vector<32x8xf32>
    %37 = tpu.matmul %35, %36, %cst_8 {dimension_numbers = #tpu.dot_dimension_numbers<[1], [0], [0], [1], [0, 0, 1, 1], [], []>} : vector<32x32xbf16>, vector<32x8xbf16>, vector<32x8xf32> -> vector<32x8xf32>
    %c0_9 = arith.constant 0 : index
    %c0_10 = arith.constant 0 : index
    %38 = vector.load %arg3[%c0_9, %c0_10] : memref<32x128xf32, #tpu.memory_space<vmem>>, vector<32x128xf32>
    %cst_11 = arith.constant 0.000000e+00 : f32
    %39 = vector.broadcast %cst_11 : f32 to vector<8x128xf32>
    %40 = vector.extract_strided_slice %37 {offsets = [0, 0], sizes = [8, 8], strides = [1, 1]} : vector<32x8xf32> to vector<8x8xf32>
    %41 = vector.extract_strided_slice %38 {offsets = [0, 0], sizes = [8, 128], strides = [1, 1]} : vector<32x128xf32> to vector<8x128xf32>
    %42 = arith.truncf %40 : vector<8x8xf32> to vector<8x8xbf16>
    %43 = arith.truncf %41 : vector<8x128xf32> to vector<8x128xbf16>
    %cst_12 = arith.constant dense<0.000000e+00> : vector<8x128xf32>
    %44 = tpu.matmul %42, %43, %cst_12 {dimension_numbers = #tpu.dot_dimension_numbers<[1], [0], [0], [1], [0, 0, 1, 1], [], []>} : vector<8x8xbf16>, vector<8x128xbf16>, vector<8x128xf32> -> vector<8x128xf32>
    %45 = arith.addf %39, %44 : vector<8x128xf32>
    %46 = vector.extract_strided_slice %37 {offsets = [8, 0], sizes = [8, 8], strides = [1, 1]} : vector<32x8xf32> to vector<8x8xf32>
    %47 = vector.extract_strided_slice %38 {offsets = [8, 0], sizes = [8, 128], strides = [1, 1]} : vector<32x128xf32> to vector<8x128xf32>
    %48 = arith.truncf %46 : vector<8x8xf32> to vector<8x8xbf16>
    %49 = arith.truncf %47 : vector<8x128xf32> to vector<8x128xbf16>
    %cst_13 = arith.constant dense<0.000000e+00> : vector<8x128xf32>
    %50 = tpu.matmul %48, %49, %cst_13 {dimension_numbers = #tpu.dot_dimension_numbers<[1], [0], [0], [1], [0, 0, 1, 1], [], []>} : vector<8x8xbf16>, vector<8x128xbf16>, vector<8x128xf32> -> vector<8x128xf32>
    %51 = arith.addf %45, %50 : vector<8x128xf32>
    %52 = vector.extract_strided_slice %37 {offsets = [16, 0], sizes = [8, 8], strides = [1, 1]} : vector<32x8xf32> to vector<8x8xf32>
    %53 = vector.extract_strided_slice %38 {offsets = [16, 0], sizes = [8, 128], strides = [1, 1]} : vector<32x128xf32> to vector<8x128xf32>
    %54 = arith.truncf %52 : vector<8x8xf32> to vector<8x8xbf16>
    %55 = arith.truncf %53 : vector<8x128xf32> to vector<8x128xbf16>
    %cst_14 = arith.constant dense<0.000000e+00> : vector<8x128xf32>
    %56 = tpu.matmul %54, %55, %cst_14 {dimension_numbers = #tpu.dot_dimension_numbers<[1], [0], [0], [1], [0, 0, 1, 1], [], []>} : vector<8x8xbf16>, vector<8x128xbf16>, vector<8x128xf32> -> vector<8x128xf32>
    %57 = arith.addf %51, %56 : vector<8x128xf32>
    %58 = vector.extract_strided_slice %37 {offsets = [24, 0], sizes = [8, 8], strides = [1, 1]} : vector<32x8xf32> to vector<8x8xf32>
    %59 = vector.extract_strided_slice %38 {offsets = [24, 0], sizes = [8, 128], strides = [1, 1]} : vector<32x128xf32> to vector<8x128xf32>
    %60 = arith.truncf %58 : vector<8x8xf32> to vector<8x8xbf16>
    %61 = arith.truncf %59 : vector<8x128xf32> to vector<8x128xbf16>
    %cst_15 = arith.constant dense<0.000000e+00> : vector<8x128xf32>
    %62 = tpu.matmul %60, %61, %cst_15 {dimension_numbers = #tpu.dot_dimension_numbers<[1], [0], [0], [1], [0, 0, 1, 1], [], []>} : vector<8x8xbf16>, vector<8x128xbf16>, vector<8x128xf32> -> vector<8x128xf32>
    %63 = arith.addf %57, %62 : vector<8x128xf32>
    %c0_16 = arith.constant 0 : index
    %c0_17 = arith.constant 0 : index
    %64 = vector.load %arg4[%c0_16, %c0_17] : memref<1x128xf32, #tpu.memory_space<vmem>>, vector<1x128xf32>
    %65 = vector.broadcast %64 : vector<1x128xf32> to vector<8x128xf32>
    %66 = arith.addf %63, %65 : vector<8x128xf32>
    %c0_18 = arith.constant 0 : index
    %c0_19 = arith.constant 0 : index
    %67 = vector.load %arg6[%c0_18, %c0_19] : memref<8x128xf32, #tpu.memory_space<vmem>>, vector<8x128xf32>
    tpu.vector_store %arg6[%c0_18, %c0_19], %66 {strides = array<i32>} : memref<8x128xf32, #tpu.memory_space<vmem>>, vector<8x128xf32>,
    return
  }
  func.func @transform_0(%arg0: i32) -> (i32, i32) {
    %c0_i32 = arith.constant 0 : i32
    %c0_i32_0 = arith.constant 0 : i32
    return %arg0, %c0_i32 : i32, i32
  }
  func.func @transform_1(%arg0: i32) -> (i32, i32) {
    %c0_i32 = arith.constant 0 : i32
    %c0_i32_0 = arith.constant 0 : i32
    %c0_i32_1 = arith.constant 0 : i32
    return %c0_i32, %c0_i32_0 : i32, i32
  }
  func.func @transform_2(%arg0: i32) -> (i32, i32) {
    %c0_i32 = arith.constant 0 : i32
    %c0_i32_0 = arith.constant 0 : i32
    %c0_i32_1 = arith.constant 0 : i32
    return %c0_i32, %c0_i32_0 : i32, i32
  }
  func.func @transform_3(%arg0: i32) -> (i32, i32) {
    %c0_i32 = arith.constant 0 : i32
    %c0_i32_0 = arith.constant 0 : i32
    %c0_i32_1 = arith.constant 0 : i32
    return %c0_i32, %c0_i32_0 : i32, i32
  }
  func.func @transform_4(%arg0: i32) -> (i32, i32) {
    %c0_i32 = arith.constant 0 : i32
    %c0_i32_0 = arith.constant 0 : i32
    %c0_i32_1 = arith.constant 0 : i32
    return %c0_i32, %c0_i32_0 : i32, i32
  }
  func.func @transform_5(%arg0: i32) -> (i32, i32) {
    %c0_i32 = arith.constant 0 : i32
    %c0_i32_0 = arith.constant 0 : i32
    return %arg0, %c0_i32 : i32, i32
  }
}

</mosaic_0001>

<bundles_post_ra>
// kernel: tpu_custom_call.1
= control target key start
LH: loop header
LB: loop body
LE: loop exit
PB: predicated region body
PF: predicated region fallthrough
CT: control target
= control target key end

     0   :  { %10 = vsyncpa [#allocation3], 0  ;;  %s1508_s0 = inlined_call_operand.hbm [shape: f32[16,32], index: 0, kind: input, shape index: {}]   ;;  %s1509_s1 = inlined_call_operand.hbm [shape: f32[32,96], index: 1, kind: input, shape index: {}]   ;;  %s1510_s2 = inlined_call_operand.hbm [shape: f32[32,128], index: 2, kind: input, shape index: {}]   ;;  %s1511_s3 = inlined_call_operand.vmem [shape: f32[1,128], index: 3, kind: input, shape index: {}]   ;;  %s1512_s4 = inlined_call_operand.hbm [shape: f32[32,32], index: 4, kind: input, shape index: {}]   ;;  %s1513_s5 = inlined_call_operand.hbm [shape: f32[16,128], index: 5, kind: output, shape index: {}]  }
   0x1   :  { %12 = vsyncpa [#allocation3 + $0x1], 0 }
   0x2   :  { %13 = vsyncpa [#allocation6], 0 }
   0x3   :  { %14 = vsyncpa [#allocation9], 0 }
   0x4   :  { %15 = vsyncpa [#allocation4], 0 }
   0x5   :  { %17 = vsyncpa [#allocation4 + $0x1], 0  ;;  %s1272_s18 = smov 0   ;;  %s1274_s19 = smov 0  }
   0x6   :  { %s1276_s20 = smov 0   ;;  %s1278_s21 = smov 0  }
   0x7 LB: > { %s1293_s22 = sadd.s32 4294967295, %s1226_s21   ;;  %s849_s23 = sadd.s32 4294967294, %s1226_s21   ;;  %s1226_s21 = sphi %s1278_s21, %s1537_s21   ;;  %s1222_s20 = sphi %s1276_s20, %s1536_s20   ;;  %s1218_s19 = sphi %s1274_s19, %s1535_s19   ;;  %s1214_s18 = sphi %s1272_s18, %s1534_s18  }
   0x8   : > { %p43_p0 = scmp.ne.s32.totalorder %s1218_s19, %s1214_s18  ;;  %p1514_p1 = scmp.eq.s32.totalorder %s1293_s22, 0 }
   0x9   : > { %p157_p3 = scmp.eq.s32.totalorder %s849_s23, 1  ;;  %p850_p5 = scmp.ge.s32.totalorder %s1226_s21, 1 }
   0xa   : > { %p1302_p4 = por %p1514_p1, %p43_p0  ;;  %p164_p7 = scmp.lt.s32.totalorder %s1226_s21, 3 }
   0xb   : > { %p1307_p6 = por %p157_p3, %p43_p0  ;;  %s1228_s27 = smov [#allocation5]  }
   0xc   : > { %s1518_s24 = scalar_select %p1302_p4, 1, 0 }
   0xd   : > { %s1519_s25 = scalar_select %p1307_p6, 1, 0 }
   0xe   : > { %p1312_p8 = pnand %p850_p5, %p164_p7  ;;  %s176_s28 = sshll.u32 %s1228_s27, 4  ;;  %s177_s28 = int_to_ptr.vmem [resolvable:$true] %s176_s28 }
   0xf   : > { %s1229_s30 = smov [#allocation7]   ;;  %s1230_s7 = smov [#allocation8]  }
  0x10   : > { %s1520_s26 = scalar_select %p1312_p8, 1, 0 }
  0x11   : > { %p962_p9 = pneg %p1312_p8  ;;  %s189_s6 = sshll.u32 %s1229_s30, 4  ;;  %s190_s6 = int_to_ptr.vmem [resolvable:$true] %s189_s6 }
  0x12   : > { %s205_s8 = sshll.u32 %s1230_s7, 4  ;;  %s1059_s9 = scalar_lea.vmem %s177_s28, 512  ;;  %s206_s8 = int_to_ptr.vmem [resolvable:$true] %s205_s8 }
  0x13   : > { %p1321_p11 = pnand %p962_p9, %p1514_p1  ;;  %p1060_p13 = scmp.ne.s32.totalorder %s177_s28, %s1059_s9 }
  0x14   : > { %p1067_p5 = scmp.lt.s32.totalorder %s177_s28, %s177_s28  ;;  %p1068_p7 = scmp.lt.s32.totalorder %s1059_s9, %s1059_s9 }
  0x15   : > { %p1050_p12 = pneg %p1321_p11 }
  0x16   : > { %p1069_p9 = por %p1068_p7, %p1067_p5 }
  0x17   : > { %p1062_p0 = pnand %p1060_p13, %p1050_p12 }
  0x19   : > { %p1063_p3 = pneg %p1062_p0 }
  0x1b   : > { %p1070_p10 = pnand %p1069_p9, %p1063_p3 }
  0x1d   : > { %1073 = shalt.err (!%p1070_p10)
}
  0x1e   : > { %s1231_s10 = smov 128   ;;  %s1232_s11 = smov 8  }
  0x1f   : > { %965 = dma.hbm_to_vmem [thread:$0]  (!%p1321_p11), %s1509_s1, 512, %s177_s28, [#allocation6], %s1231_s10, %s1231_s10, %s1232_s11  }
  0x20   : > { %s1085_s14 = scalar_lea.vmem %s190_s6, 512  ;;  %p1093_p2 = scmp.lt.s32.totalorder %s190_s6, %s190_s6 }
  0x21   : > { %p1086_p1 = scmp.ne.s32.totalorder %s190_s6, %s1085_s14  ;;  %p1094_p6 = scmp.lt.s32.totalorder %s1085_s14, %s1085_s14 }
  0x23   : > { %p1088_p13 = pnand %p1086_p1, %p1050_p12  ;;  %p1095_p5 = por %p1094_p6, %p1093_p2 }
  0x25   : > { %p1089_p0 = pneg %p1088_p13 }
  0x27   : > { %p1096_p3 = pnand %p1095_p5, %p1089_p0 }
  0x29   : > { %1099 = shalt.err (!%p1096_p3)
}
  0x2a   : > { %968 = dma.hbm_to_vmem [thread:$0]  (!%p1321_p11), %s1510_s2, 512, %s190_s6, [#allocation6], %s1231_s10, %s1231_s10, %s1232_s11  }
  0x2b   : > { %s1111_s17 = scalar_lea.vmem %s206_s8, 512  ;;  %p1119_p9 = scmp.lt.s32.totalorder %s206_s8, %s206_s8 }
  0x2c   : > { %p1112_p10 = scmp.ne.s32.totalorder %s206_s8, %s1111_s17  ;;  %p1120_p13 = scmp.lt.s32.totalorder %s1111_s17, %s1111_s17 }
  0x2e   : > { %p1114_p7 = pnand %p1112_p10, %p1050_p12  ;;  %p1121_p4 = por %p1120_p13, %p1119_p9 }
  0x30   : > { %p1115_p1 = pneg %p1114_p7 }
  0x32   : > { %p1122_p2 = pnand %p1121_p4, %p1115_p1 }
  0x34   : > { %1125 = shalt.err (!%p1122_p2)
}
  0x35   : > { %971 = dma.hbm_to_vmem [thread:$0]  (!%p1321_p11), %s1512_s4, 512, %s206_s8, [#allocation9], %s1231_s10, %s1231_s10, %s1232_s11  }
  0x36   : > { %s1352_s28 = sadd.s32 1, %s1226_s21   ;;  %s30_s29 = sadd.s32 1, %s1222_s20 }
  0x37   : > { %s27_s30 = ssub.s32 %s1226_s21, %s1352_s28  ;;  %p37_p6 = scmp.ne.s32.totalorder %s1222_s20, %s1218_s19 }
  0x38   : > { %p28_p4 = scmp.eq.s32.totalorder %s27_s30, 0  ;;  %p38_p12 = scmp.eq.s32.totalorder %s1226_s21, 0 }
  0x39   : > { %p983_p0 = scmp.lt.s32.totalorder %s1226_s21, 2  ;;  %p1522_p3 = scmp.eq.s32.totalorder %s1293_s22, 1 }
  0x3a   : > { %s1362_s6 = scalar_select %p28_p4, %s1222_s20, %s30_s29  }
  0x3b   : > { %p39_p5 = por %p38_p12, %p37_p6  ;;  %p1366_p10 = por %p1522_p3, %p37_p6 }
  0x3c   : > { %s219_s9 = sand.u32 1, %s1222_s20   ;;  %s856_s12 = sshll.u32 %s1226_s21, 7 }
  0x3d   : > { %s1523_s7 = scalar_select %p1366_p10, 1, 0 }
  0x3e   : > { %s855_s8 = sshll.u32 %s219_s9, 3  ;;  %s1375_s13 = scalar_lea.hbm %s1508_s0, %s856_s12 }
  0x3f   : > { %s223_s14 = scalar_lea.vmem [#allocation2], %s855_s8  ;;  %p1377_p11 = pnand %p983_p0, %p39_p5 }
  0x40   : > { %s230_s15 = sshll.u32 %s223_s14, 4  ;;  %s220_s17 = scalar_lea.sflag [#allocation3], %s219_s9  ;;  %s231_s15 = int_to_ptr.vmem [resolvable:$true] %s230_s15 }
  0x41   : > { %s1126_s23 = scalar_lea.hbm %s1375_s13, 128  ;;  %p1128_p1 = pneg %p1377_p11 }
  0x42   : > { %p1127_p7 = scmp.ne.s32.totalorder %s1375_s13, %s1126_s23  ;;  %s1131_s29 = scalar_lea.hbm %s1508_s0, 256 }
  0x43   : > { %p1132_p2 = scmp.lt.s32.totalorder %s1375_s13, %s1508_s0  ;;  %p1133_p4 = scmp.lt.s32.totalorder %s1131_s29, %s1126_s23 }
  0x44   : > { %p1129_p9 = pnand %p1128_p1, %p1127_p7 }
  0x45   : > { %p1134_p6 = por %p1133_p4, %p1132_p2 }
  0x46   : > { %p1130_p13 = pneg %p1129_p9 }
  0x48   : > { %p1135_p12 = pnand %p1134_p6, %p1130_p13 }
  0x4a   : > { %1138 = shalt.err (!%p1135_p12)
}
  0x4b   : > { %s1139_s10 = scalar_lea.vmem %s231_s15, 128  ;;  %s1233_s9 = smov [#allocation2]  }
  0x4c   : > { %p1140_p0 = scmp.ne.s32.totalorder %s231_s15, %s1139_s10  ;;  %s1144_s11 = sshll.u32 %s1233_s9, 4  ;;  %s1145_s11 = int_to_ptr.vmem [resolvable:$false] %s1144_s11 }
  0x4d   : > { %s1146_s14 = scalar_lea.vmem %s1145_s11, 256  ;;  %p1147_p7 = scmp.lt.s32.totalorder %s231_s15, %s1145_s11 }
  0x4e   : > { %p1142_p5 = pnand %p1140_p0, %p1128_p1  ;;  %p1148_p9 = scmp.lt.s32.totalorder %s1146_s14, %s1139_s10 }
  0x50   : > { %p1143_p3 = pneg %p1142_p5  ;;  %p1149_p10 = por %p1148_p9, %p1147_p7 }
  0x52   : > { %p1150_p8 = pnand %p1149_p10, %p1143_p3 }
  0x54   : > { %1153 = shalt.err (!%p1150_p8)
}
  0x55   : > { %975 = dma.hbm_to_vmem [thread:$0]  (!%p1377_p11), %s1375_s13, 128, %s231_s15, %s220_s17  }
  0x56   : > { %p1525_p13 = scmp.ne.s32.totalorder %s1520_s26, 0 }
  0x57   : > { %s1398_s23 = sand.u32 (!%p1525_p13), 1, %s1218_s19   ;;  %p1526_p10 = scmp.ne.s32.totalorder (!%p1525_p13), %s1518_s24, 0 }
  0x58   : > { %239 = sbr.rel (%p1525_p13) target bundleno = 1500 (0x5dc), region = 40  ;;  %s858_s27 = sshll.u32 (!%p1525_p13), %s1398_s23, 3 }
  0x59   : > { %s242_s30 = scalar_lea.sflag (!%p1525_p13), [#allocation3], %s1398_s23  ;;  %s245_s29 = scalar_lea.vmem (!%p1525_p13), [#allocation2], %s858_s27 }
  0x5d   : > { %1197 = dma.done.wait (%p1526_p10), %s242_s30, 128  }
  0x5e   : > { %1199 = vsyncadd (%p1526_p10), %s242_s30, 4294967168  ;;  %p1527_p8 = scmp.eq.s32.totalorder %s1293_s22, 0 }
  0x60   : > { %1201 = dma.done.wait (%p1527_p8), [#allocation6], 1024   ;;  %p1528_p11 = pmov %p1527_p8 }
  0x61   : > { %p1529_p1 = pmov %p1527_p8 }
  0x62   : > { %1203 = vsyncadd (%p1528_p11), [#allocation6], 4294966272 }
  0x63   : > { %1205 = dma.done.wait (%p1529_p1), [#allocation9], 512   ;;  %p1530_p2 = pmov %p1529_p1 }
  0x64   : > { %v1234_v0 = vmov 0.0   ;;  %vm1235_vm0 = vmmov 0   ;;  %v289_v1 = vld [vmem:[#allocation5 + $0x10] sm:$0xff]  ;;  %v290_v2 = vld [vmem:[#allocation5 + $0x18] sm:$0xff]  ;;  %v287_v3 = vld [vmem:[#allocation5] sm:$0xff]  ;;  %vm293_vm1 = vcmask 261120  }
  0x65   : > { %1207 = vsyncadd (%p1530_p2), [#allocation9], 4294966784  ;;  %896 = vmatprep.subr.bf16.mxu0 %v1234_v0  ;;  %900 = vmatprep.mubr.msk.bf16.mxu0 %vm1235_vm0, %v1234_v0  ;;  %v292_v4 = vpack.c.bf16 %v290_v2, %v289_v1  ;;  %v288_v5 = vld [vmem:[#allocation5 + $0x8] sm:$0xff]  ;;  %v285_v7 = vld [vmem:[%s245_s29] sm:$0xff]  ;;  %s1236_s24 = smov 120   ;;  %s1237_s26 = smov 112  }
  0x66   : > { %v291_v6 = vpack.c.bf16 %v288_v5, %v287_v3  ;;  %v286_v8 = vpack.c.bf16 %v285_v7, %v285_v7  ;;  %s1238_s13 = smov 104   ;;  %vm359_vm2 = vcmask 64512   ;;  %s1239_s15 = smov 96   ;;  %v349_v23 = vld [vmem:[#allocation8] sm:$0xff]  ;;  %v352_v25 = vld [vmem:[#allocation8 + $0x18] sm:$0xff]  ;;  %v350_v28 = vld [vmem:[#allocation8 + $0x8] sm:$0xff] }
  0x67   : > { %897 = vmatpush3.bf16.msra.mxu0 %v292_v4  ;;  %v351_v31 = vld [vmem:[#allocation8 + $0x10] sm:$0xff]  ;;  %s1240_s16 = smov 64   ;;  %vm539_vm3 = vcmask 1043456   ;;  %s874_s8 = sshll.u32 %s1293_s22, 7 }
  0x68   : > { %898 = vmatprep.subr.bf16.mxu0 %v1234_v0  ;;  %s283_s10 = scalar_lea.vmem [#allocation10], %s858_s27  ;;  %s1471_s30 = scalar_lea.hbm %s1513_s5, %s874_s8 }
  0x69   : > { %s750_s9 = sshll.u32 %s283_s10, 4  ;;  %s737_s29 = scalar_lea.sflag [#allocation4], %s1398_s23  ;;  %s751_s9 = int_to_ptr.vmem [resolvable:$true] %s750_s9 }
  0x6a   : > { %p1531_p6 = scmp.ne.s32.totalorder %s1523_s7, 0  ;;  %s1241_s22 = smov [#allocation10]  }
  0x6b   : > { %899 = vmatpush3.bf16.msra.mxu0 %v291_v6  ;;  %s1158_s27 = sshll.u32 %s1241_s22, 4  ;;  %s1159_s27 = int_to_ptr.vmem [resolvable:$false] %s1158_s27 }
  0x6c   : > { %p1161_p5 = scmp.lt.s32.totalorder %s751_s9, %s1159_s27 }
  0x6e   : > { %901 = vmatmul.mubr.msk.bf16.vlgmr.msra.gmra.mxu0 %vm293_vm1, %v286_v8 }
 0x12e   : > { %v331_v9 = vpop.f32.mrf.mxu0 }
 0x12f   : > { %338 = vrot.lane.b32.xlu1 %v331_v9, %s1236_s24  ;;  %341 = vrot.lane.b32.xlu0 %v331_v9, %s1237_s26  ;;  %s1154_s24 = scalar_lea.vmem %s751_s9, 128  ;;  %s1160_s26 = scalar_lea.vmem %s1159_s27, 256 }
 0x130   : > { %v902_v10 = vpop.f32.mrf.mxu0  ;;  %p1155_p4 = scmp.ne.s32.totalorder %s751_s9, %s1154_s24  ;;  %p1162_p3 = scmp.lt.s32.totalorder %s1160_s26, %s1154_s24 }
 0x132   : > { %v334_v11 = vpop.f32.mrf.mxu0  ;;  %p1156_p12 = pnand %p1155_p4, %p1531_p6  ;;  %p1163_p7 = por %p1162_p3, %p1161_p5 }
 0x133   : > { %344 = vrot.lane.b32.xlu0 %v331_v9, %s1238_s13  ;;  %v528_v11 = vld [vmem:[#allocation7] sm:$0xff] }
 0x134   : > { %v903_v12 = vpop.f32.mrf.mxu0  ;;  %p1157_p0 = pneg %p1156_p12 }
 0x135   : > { %v533_v12 = vpack.c.bf16 %v528_v11, %v528_v11 }
 0x136   : > { %p1164_p9 = pnand %p1163_p7, %p1157_p0 }
 0x1a1   : > { %v339_v13 = vpop.permute.xlu1 %338  ;;  %v342_v14 = vpop.permute.xlu0 %341 }
 0x1a2   : > { %v1421_v15 = vpack.c.bf16 %v339_v13, %v331_v9  ;;  %v529_v13 = vld [vmem:[#allocation7 + $0x8] sm:$0xff] }
 0x1a4   : > { %908 = vmatprep.mubr.msk.bf16.mxu1 %vm359_vm2, %v1421_v15  ;;  %355 = vrot.lane.b32.xlu0 %v1421_v15, %s1239_s15 }
 0x1a5   : > { %v345_v16 = vpop.permute.xlu0 %344 }
 0x1a6   : > { %v348_v17 = vpack.c.bf16 %v345_v16, %v342_v14  ;;  %v535_v14 = vpack.c.bf16 %v529_v13, %v529_v13 }
 0x1a8   : > { %357 = vrot.lane.b32.xlu1 %v348_v17, %s1239_s15  ;;  %v541_v16 = vsel %vm539_vm3, %v535_v14, 0 }
 0x216   : > { %v356_v20 = vpop.permute.xlu0 %355 }
 0x217   : > { %v367_v21 = vsel %vm359_vm2, %v356_v20, 0 }
 0x21a   : > { %v358_v18 = vpop.permute.xlu1 %357 }
 0x21b   : > { %944 = vmatprep.subr.msk.bf16.mxu1 %vm359_vm2, %v358_v18  ;;  %v370_v19 = vsel %vm359_vm2, %v358_v18, 0 }
 0x21c   : > { %905 = vmatpush3.bf16.xpose.msra.mxu1 %v370_v19 }
 0x21d   : > { %945 = vmatprep.subr.msk.bf16.mxu1 %vm359_vm2, %v356_v20  ;;  %v530_v20 = vld [vmem:[#allocation7 + $0x10] sm:$0xff] }
 0x224   : > { %907 = vmatpush3.bf16.xpose.msra.mxu1 %v367_v21 }
 0x225   : > { %926 = vmatprep.subr.bf16.mxu1 %v1234_v0 }
 0x22b   : > { %909 = vmatmul.mubr.msk.bf16.vlgmr.msra.gmra.mxu1 %vm359_vm2, %v348_v17 }
 0x22c   : > { %928 = vmatprep.mubr.msk.bf16.mxu1 %vm1235_vm0, %v1234_v0 }
 0x2eb   : > { %v910_v22 = vpop.f32.mrf.mxu1 }
 0x2ec   : > { %v415_v34 = vadd.f32 %v910_v22, %v351_v31 }
 0x2ed   : > { %v406_v24 = vpop.f32.mrf.mxu1 }
 0x2ee   : > { %v407_v26 = vadd.f32 %v406_v24, %v349_v23  ;;  %v427_v37 = vsel %vm293_vm1, %v415_v34, -inf  ;;  %v630_v23 = vpack.c.bf16 %v530_v20, %v530_v20 }
 0x2ef   : > { %v911_v27 = vpop.f32.mrf.mxu1 }
 0x2f0   : > { %v418_v29 = vadd.f32 %v911_v27, %v352_v25  ;;  %v421_v30 = vsel %vm293_vm1, %v407_v26, -inf }
 0x2f1   : > { %v409_v32 = vpop.f32.mrf.mxu1  ;;  %422 = vmax.xlane.f32.xlu1 %v421_v30 }
 0x2f2   : > { %v410_v33 = vadd.f32 %v409_v32, %v350_v28  ;;  %v430_v36 = vsel %vm293_vm1, %v418_v29, -inf  ;;  %v635_v28 = vsel %vm539_vm3, %v630_v23, 0 }
 0x2f4   : > { %v424_v35 = vsel %vm293_vm1, %v410_v33, -inf }
 0x2f5   : > { %425 = vmax.xlane.f32.xlu0 %v424_v35  ;;  %431 = vmax.xlane.f32.xlu1 %v430_v36 }
 0x2f9   : > { %428 = vmax.xlane.f32.xlu0 %v427_v37 }
 0x37a   : > { %v423_v38 = vpop.xlane.xlu1 %422 }
 0x37b   : > { %v433_v43 = vsub.f32 %v407_v26, %v423_v38 }
 0x37d   : > { %v437_v48 = vmul.f32 1.442695, %v433_v43 }
 0x37e   : > { %v426_v39 = vpop.xlane.xlu0 %425  ;;  %v432_v40 = vpop.xlane.xlu1 %431 }
 0x37f   : > { %v434_v41 = vsub.f32 %v410_v33, %v426_v39  ;;  %v436_v42 = vsub.f32 %v418_v29, %v432_v40 }
 0x381   : > { %v443_v44 = vmul.f32 1.442695, %v436_v42  ;;  %v439_v45 = vmul.f32 1.442695, %v434_v41 }
 0x382   : > { %v429_v46 = vpop.xlane.xlu0 %428 }
 0x383   : > { %v435_v47 = vsub.f32 %v415_v34, %v429_v46  ;;  %1032 = vpow2.f32 %v443_v44  ;;  %v872_v44 = vld [vmem:[%s1511_s3] ss:$0 sm:$0xff] }
 0x384   : > { %1034 = vpow2.f32 %v439_v45 }
 0x385   : > { %v441_v49 = vmul.f32 1.442695, %v435_v47 }
 0x387   : > { %1036 = vpow2.f32 %v441_v49 }
 0x388   : > { %1038 = vpow2.f32 %v437_v48 }
 0x390   : > { %v1033_v50 = vpop.eup %1032 }
 0x391   : > { %v454_v51 = vsel %vm293_vm1, %v1033_v50, 0.0  ;;  %v1035_v52 = vpop.eup %1034 }
 0x392   : > { %455 = vadd.xlane.f32.xlu1 %v454_v51  ;;  %v448_v56 = vsel %vm293_vm1, %v1035_v52, 0.0 }
 0x394   : > { %v1037_v53 = vpop.eup %1036 }
 0x395   : > { %v451_v54 = vsel %vm293_vm1, %v1037_v53, 0.0  ;;  %v1039_v55 = vpop.eup %1038 }
 0x396   : > { %452 = vadd.xlane.f32.xlu0 %v451_v54  ;;  %449 = vadd.xlane.f32.xlu1 %v448_v56  ;;  %v445_v57 = vsel %vm293_vm1, %v1039_v55, 0.0 }
 0x39a   : > { %446 = vadd.xlane.f32.xlu0 %v445_v57 }
 0x3a7   : > { %467 = vrot.lane.b32.xlu1 %v1421_v15, %s1240_s16  ;;  %v587_v15 = vsel %vm539_vm3, %v533_v12, 0 }
 0x3a8   : > { %927 = vmatpush3.bf16.msra.mxu1 %v587_v15 }
 0x3a9   : > { %938 = vmatprep.subr.bf16.mxu1 %v1234_v0 }
 0x3b0   : > { %469 = vrot.lane.b32.xlu0 %v348_v17, %s1240_s16  ;;  %v531_v17 = vld [vmem:[#allocation7 + $0x18] sm:$0xff] }
 0x3b1   : > { %v679_v18 = vpack.c.bf16 %v531_v17, %v531_v17 }
 0x3b3   : > { %v684_v24 = vsel %vm539_vm3, %v679_v18, 0 }
 0x41b   : > { %v456_v58 = vpop.xlane.xlu1 %455 }
 0x41f   : > { %v453_v59 = vpop.xlane.xlu0 %452  ;;  %v450_v60 = vpop.xlane.xlu1 %449 }
 0x420   : > { %1040 = vrcp.f32 %v453_v59 }
 0x421   : > { %1042 = vrcp.f32 %v450_v60 }
 0x422   : > { %1044 = vrcp.f32 %v456_v58 }
 0x423   : > { %v447_v61 = vpop.xlane.xlu0 %446  ;;  %v468_v63 = vpop.permute.xlu1 %467 }
 0x424   : > { %1046 = vrcp.f32 %v447_v61 }
 0x427   : > { %v470_v62 = vpop.permute.xlu0 %469 }
 0x428   : > { %912 = vmatprep.subr.bf16.mxu0 %v470_v62 }
 0x429   : > { %913 = vmatpush3.bf16.msra.mxu0 %v470_v62 }
 0x42a   : > { %914 = vmatprep.subr.bf16.mxu0 %v468_v63 }
 0x42d   : > { %915 = vmatpush3.bf16.msra.mxu0 %v468_v63  ;;  %v1041_v1 = vpop.eup %1040 }
 0x42e   : > { %920 = vmatprep.subr.bf16.mxu0 %v1234_v0  ;;  %v1043_v2 = vpop.eup %1042  ;;  %v463_v5 = vmul.f32 %v1041_v1, %v1037_v53 }
 0x42f   : > { %v1045_v3 = vpop.eup %1044  ;;  %v462_v7 = vmul.f32 %v1043_v2, %v1035_v52 }
 0x430   : > { %v464_v8 = vmul.f32 %v1045_v3, %v1033_v50 }
 0x431   : > { %v1047_v4 = vpop.eup %1046 }
 0x432   : > { %v461_v6 = vmul.f32 %v1047_v4, %v1039_v55  ;;  %v466_v10 = vpack.c.bf16 %v464_v8, %v463_v5 }
 0x434   : > { %v465_v9 = vpack.c.bf16 %v462_v7, %v461_v6 }
 0x436   : > { %916 = vmatprep.mubr.msk.bf16.mxu0 %vm293_vm1, %v465_v9 }
 0x437   : > { %917 = vmatmul.mubr.msk.bf16.vlgmr.msra.gmra.mxu0 %vm293_vm1, %v466_v10 }
 0x438   : > { %922 = vmatprep.mubr.msk.bf16.mxu0 %vm1235_vm0, %v1234_v0  ;;  %921 = vmatpush3.bf16.msra.mxu0 %v541_v16 }
 0x439   : > { %932 = vmatprep.subr.bf16.mxu0 %v1234_v0 }
 0x4f7   : > { %v918_v19 = vpop.f32.mrf.mxu0 }
 0x4f8   : > { %v629_v30 = vpack.c.bf16 %v918_v19, %v918_v19 }
 0x4f9   : > { %v513_v21 = vpop.f32.mrf.mxu0 }
 0x4fa   : > { %v532_v22 = vpack.c.bf16 %v513_v21, %v513_v21 }
 0x4fb   : > { %v919_v25 = vpop.f32.mrf.mxu0 }
 0x4fc   : > { %929 = vmatmul.mubr.msk.bf16.vlgmr.msra.gmra.mxu1 %vm359_vm2, %v532_v22  ;;  %v678_v29 = vpack.c.bf16 %v919_v25, %v919_v25 }
 0x4fd   : > { %v516_v26 = vpop.f32.mrf.mxu0  ;;  %939 = vmatpush3.bf16.msra.mxu1 %v684_v24  ;;  %940 = vmatprep.mubr.msk.bf16.mxu1 %vm1235_vm0, %v1234_v0 }
 0x4fe   : > { %v534_v27 = vpack.c.bf16 %v516_v26, %v516_v26 }
 0x500   : > { %923 = vmatmul.mubr.msk.bf16.vlgmr.msra.gmra.mxu0 %vm359_vm2, %v534_v27 }
 0x501   : > { %933 = vmatpush3.bf16.msra.mxu0 %v635_v28  ;;  %934 = vmatprep.mubr.msk.bf16.mxu0 %vm1235_vm0, %v1234_v0 }
 0x504   : > { %941 = vmatmul.mubr.msk.bf16.vlgmr.msra.gmra.mxu1 %vm359_vm2, %v678_v29 }
 0x508   : > { %935 = vmatmul.mubr.msk.bf16.vlgmr.msra.gmra.mxu0 %vm359_vm2, %v629_v30 }
 0x5bc   : > { %v623_v31 = vpop.f32.mrf.mxu1 }
 0x5be   : > { %v930_v32 = vpop.f32.mrf.mxu1 }
 0x5c0   : > { %v577_v33 = vpop.f32.mrf.mxu0  ;;  %v626_v34 = vpop.f32.mrf.mxu1 }
 0x5c1   : > { %v624_v41 = vadd.f32 %v623_v31, %v577_v33 }
 0x5c2   : > { %v924_v35 = vpop.f32.mrf.mxu0  ;;  %v931_v36 = vpop.f32.mrf.mxu1 }
 0x5c4   : > { %v580_v37 = vpop.f32.mrf.mxu0  ;;  %v720_v38 = vpop.f32.mrf.mxu1 }
 0x5c6   : > { %v925_v39 = vpop.f32.mrf.mxu0  ;;  %v942_v40 = vpop.f32.mrf.mxu1 }
 0x5c8   : > { %v671_v0 = vpop.f32.mrf.mxu0  ;;  %v723_v42 = vpop.f32.mrf.mxu1 }
 0x5c9   : > { %v677_v43 = vadd.f32 %v671_v0, %v624_v41 }
 0x5ca   : > { %v936_v45 = vpop.f32.mrf.mxu0  ;;  %v943_v46 = vpop.f32.mrf.mxu1 }
 0x5cb   : > { %v726_v47 = vadd.f32 %v720_v38, %v677_v43 }
 0x5cc   : > { %v674_v48 = vpop.f32.mrf.mxu0 }
 0x5cd   : > { %v734_v49 = vadd.f32 %v872_v44, %v726_v47 }
 0x5ce   : > { %v937_v50 = vpop.f32.mrf.mxu0 }
 0x5cf   : > { %735 = vst [vmem:[%s283_s10] sm:$0xff] %v734_v49 }
 0x5d0   : > { %1167 = shalt.err (!%p1164_p9)
}
 0x5d1   : > { %s1168_s13 = scalar_lea.hbm %s1471_s30, 128  ;;  %s1172_s16 = scalar_lea.hbm %s1513_s5, 256 }
 0x5d2   : > { %p1169_p13 = scmp.ne.s32.totalorder %s1471_s30, %s1168_s13  ;;  %p1173_p11 = scmp.lt.s32.totalorder %s1471_s30, %s1513_s5 }
 0x5d3   : > { %p1174_p1 = scmp.lt.s32.totalorder %s1172_s16, %s1168_s13 }
 0x5d4   : > { %p1170_p10 = pnand %p1169_p13, %p1531_p6 }
 0x5d5   : > { %p1175_p2 = por %p1174_p1, %p1173_p11 }
 0x5d6   : > { %p1171_p8 = pneg %p1170_p10 }
 0x5d8   : > { %p1176_p4 = pnand %p1175_p2, %p1171_p8 }
 0x5da   : > { %1179 = shalt.err (!%p1176_p4)
}
 0x5db   : > { %960 = dma.vmem_to_hbm [thread:$0]  (%p1531_p6), %s751_s9, 128, %s1471_s30, %s737_s29  }
 0x5dc PF: > { %s762_s8 = sand.u32 1, %s1214_s18   ;;  %p1532_p12 = scmp.ne.s32.totalorder %s1519_s25, 0 }
 0x5dd   : > { %p1533_p0 = scmp.ge.s32.totalorder %s1226_s21, 2  ;;  %s763_s10 = scalar_lea.sflag [#allocation4], %s762_s8 }
 0x5df   : > { %p977_p5 = pnand %p1533_p0, %p1532_p12 }
 0x5e1   : > { %p978_p3 = pneg %p977_p5 }
 0x5e3   : > { %1209 = dma.done.wait (%p978_p3), %s763_s10, 128  }
 0x5e4   : > { %1211 = vsyncadd (%p978_p3), %s763_s10, 4294967168  ;;  %p20_p7 = scmp.ge.s32.totalorder %s1352_s28, 4   ;;  %s1534_s18 = smov %s1218_s19 }
 0x5e5   : > { %s1535_s19 = smov %s1222_s20  ;;  %s1536_s20 = smov %s1362_s6 }
 0x5e6   : > { %s1537_s21 = smov %s1352_s28  ;;  %22 = sbr.rel (!%p20_p7) target bundleno = 7 (0x7), region = 97 }
 0x5eb   :  { %768 = vsyncpa [#allocation3], 1 }
 0x5ec   :  { %770 = vsyncpa [#allocation3 + $0x1], 1 }
 0x5ed   :  { %771 = vsyncpa [#allocation6], 1 }
 0x5ee   :  { %772 = vsyncpa [#allocation9], 1 }
 0x5ef   :  { %773 = vsyncpa [#allocation4], 1 }
 0x5f0   :  { %775 = vsyncpa [#allocation4 + $0x1], 1 }

</bundles_post_ra>
